<compile_context>
chip_gen: v6e
topology: v6e:2x2x1
jax: 0.10.0
libtpu: 0.0.40
codegen_flags: <defaults>
</compile_context>

<pallas_src>
import functools
import math

import jax
import jax.numpy as jnp
from jax.experimental import pallas as pl
from jax.experimental.pallas import tpu as pltpu


_LANES = 128          # pad num_outputs to full lane width once at init
_NEG_PAD = -1e30      # bias of padded output columns: exp()->0, never wins argmax,
                      # stays finite (no inf*0 NaNs in the entropy sum)
_DEFAULT_TB = 512     # batch tile (rows); small enough for v7x's 64 MiB VMEM


def _round_up(x, m):
    return ((x + m - 1) // m) * m


def _batch_tiling(B, tb=_DEFAULT_TB):
    TB = min(tb, _round_up(B, 8))          # sublane-aligned batch tile
    B_pad = _round_up(B, TB)
    return TB, B_pad


def _pad_batch(a, B_pad):
    B = a.shape[0]
    if B == B_pad:
        return a
    pad = [(0, B_pad - B)] + [(0, 0)] * (a.ndim - 1)
    return jnp.pad(a, pad)


def _compiler_params():
    return pltpu.CompilerParams(
        dimension_semantics=("parallel",),       # batch axis: megacore on v7x
        vmem_limit_bytes=32 * 1024 * 1024,       # explicit; safe on v5e/v6e/v7x
    )


# ---------------------------------------------------------------------------
# Parameter prep: done ONCE at init.  PyTorch nn.Linear stores weight as
# (num_outputs, num_inputs); we keep it pre-transposed, bf16, and lane-padded.
# ---------------------------------------------------------------------------
def prepare_params(weight, bias):
    w = jnp.asarray(weight, dtype=jnp.float32)          # (num_outputs, num_inputs)
    b = jnp.asarray(bias, dtype=jnp.float32)            # (num_outputs,)
    num_outputs, num_inputs = w.shape
    n_pad = _round_up(max(num_outputs, _LANES), _LANES)
    w_t = jnp.zeros((num_inputs, n_pad), dtype=jnp.bfloat16)
    w_t = w_t.at[:, :num_outputs].set(w.T.astype(jnp.bfloat16))
    b2d = jnp.full((1, n_pad), _NEG_PAD, dtype=jnp.float32)
    b2d = b2d.at[:, :num_outputs].set(b)
    return w_t, b2d, num_outputs


def init_categorical_params(key, num_inputs, num_outputs):
    """nn.Linear-style init U(-1/sqrt(fan_in), 1/sqrt(fan_in)), in kernel layout."""
    bound = 1.0 / math.sqrt(num_inputs)
    kw, kb = jax.random.split(key)
    weight = jax.random.uniform(kw, (num_outputs, num_inputs),
                                minval=-bound, maxval=bound, dtype=jnp.float32)
    bias = jax.random.uniform(kb, (num_outputs,),
                              minval=-bound, maxval=bound, dtype=jnp.float32)
    return prepare_params(weight, bias)


# ---------------------------------------------------------------------------
# Kernel helpers (traced inside kernel bodies; everything full-lane f32)
# ---------------------------------------------------------------------------
def _logits(x_ref, w_ref, b_ref):
    return jnp.dot(x_ref[...], w_ref[...],
                   preferred_element_type=jnp.float32) + b_ref[...]


def _softmax_stats(logits):
    m = jnp.max(logits, axis=-1, keepdims=True)
    shifted = logits - m
    e = jnp.exp(shifted)
    denom = jnp.sum(e, axis=-1, keepdims=True)
    log_probs = shifted - jnp.log(denom)
    probs = e / denom
    return log_probs, probs


def _first_argmax(vals):
    # first-max argmax along lanes (matches torch.max(1)[1] tie behavior)
    TB, N = vals.shape
    m = jnp.max(vals, axis=-1, keepdims=True)
    col = jax.lax.broadcasted_iota(jnp.int32, (TB, N), 1)
    return jnp.min(jnp.where(vals == m, col, N), axis=-1, keepdims=True)


def _gathered_logprob(log_probs, idx):
    TB, N = log_probs.shape
    col = jax.lax.broadcasted_iota(jnp.int32, (TB, N), 1)
    onehot = (col == idx).astype(jnp.float32)
    return jnp.sum(onehot * log_probs, axis=-1, keepdims=True)


# ---------------------------------------------------------------------------
# Kernels
# ---------------------------------------------------------------------------
def _linear_kernel(x_ref, w_ref, b_ref, o_ref):
    o_ref[...] = _logits(x_ref, w_ref, b_ref).astype(o_ref.dtype)


def _logprobs_entropy_kernel(x_ref, w_ref, b_ref, a_ref, alp_ref, ent_ref):
    logits = _logits(x_ref, w_ref, b_ref)
    log_probs, probs = _softmax_stats(logits)
    alp_ref[...] = _gathered_logprob(log_probs, a_ref[...])
    ent_ref[...] = -jnp.sum(log_probs * probs, axis=-1, keepdims=True)   # per-row


def _sample_det_kernel(x_ref, w_ref, b_ref, a_ref):
    logits = _logits(x_ref, w_ref, b_ref)
    a_ref[...] = _first_argmax(logits).astype(a_ref.dtype)


def _sample_sto_kernel(x_ref, w_ref, b_ref, g_ref, a_ref):
    # Gumbel-max: argmax(logits + g) == multinomial(softmax(logits)).
    # TODO(synk): on-chip pltpu.prng_seed/prng_random_bits would avoid streaming
    # the noise from HBM, but they are not supported on the interpret path.
    logits = _logits(x_ref, w_ref, b_ref) + g_ref[...]
    a_ref[...] = _first_argmax(logits).astype(a_ref.dtype)


def _act_det_kernel(x_ref, w_ref, b_ref, a_ref, alp_ref, ent_ref):
    logits = _logits(x_ref, w_ref, b_ref)
    log_probs, probs = _softmax_stats(logits)
    idx = _first_argmax(logits)
    a_ref[...] = idx.astype(a_ref.dtype)
    alp_ref[...] = _gathered_logprob(log_probs, idx)
    ent_ref[...] = -jnp.sum(log_probs * probs, axis=-1, keepdims=True)


def _act_sto_kernel(x_ref, w_ref, b_ref, g_ref, a_ref, alp_ref, ent_ref):
    logits = _logits(x_ref, w_ref, b_ref)
    log_probs, probs = _softmax_stats(logits)
    idx = _first_argmax(logits + g_ref[...])
    a_ref[...] = idx.astype(a_ref.dtype)
    alp_ref[...] = _gathered_logprob(log_probs, idx)
    ent_ref[...] = -jnp.sum(log_probs * probs, axis=-1, keepdims=True)


# ---------------------------------------------------------------------------
# Wrappers (batch grid, lane-padded params, bf16 activations)
# ---------------------------------------------------------------------------
def _common_specs(TB, num_inputs, n_pad):
    x_spec = pl.BlockSpec((TB, num_inputs), lambda i: (i, 0))
    w_spec = pl.BlockSpec((num_inputs, n_pad), lambda i: (0, 0))   # VMEM-resident
    b_spec = pl.BlockSpec((1, n_pad), lambda i: (0, 0))            # VMEM-resident
    return x_spec, w_spec, b_spec


def _row_spec(TB):
    return pl.BlockSpec((TB, 1), lambda i: (i, 0))


def _lane_spec(TB, n_pad):
    return pl.BlockSpec((TB, n_pad), lambda i: (i, 0))


def _cost(B_pad, num_inputs, n_pad, transc_per_elem):
    return pl.CostEstimate(
        flops=2 * B_pad * num_inputs * n_pad + 8 * B_pad * n_pad,
        transcendentals=transc_per_elem * B_pad * n_pad,
        bytes_accessed=2 * B_pad * num_inputs + 2 * num_inputs * n_pad
                       + 4 * n_pad + 4 * B_pad * n_pad,
    )


def categorical_forward(x, w_t, b2d, num_outputs):
    B, num_inputs = x.shape
    n_pad = w_t.shape[1]
    TB, B_pad = _batch_tiling(B)
    x_p = _pad_batch(x.astype(jnp.bfloat16), B_pad)
    x_spec, w_spec, b_spec = _common_specs(TB, num_inputs, n_pad)
    logits = pl.pallas_call(
        _linear_kernel,
        grid=(B_pad // TB,),
        out_shape=jax.ShapeDtypeStruct((B_pad, n_pad), jnp.float32),
        in_specs=[x_spec, w_spec, b_spec],
        out_specs=_lane_spec(TB, n_pad),
        compiler_params=_compiler_params(),
        cost_estimate=_cost(B_pad, num_inputs, n_pad, 0),
    )(x_p, w_t, b2d)
    return logits[:B, :num_outputs]


def categorical_logprobs_and_entropy(x, w_t, b2d, num_outputs, actions):
    B, num_inputs = x.shape
    n_pad = w_t.shape[1]
    TB, B_pad = _batch_tiling(B)
    x_p = _pad_batch(x.astype(jnp.bfloat16), B_pad)
    a_p = _pad_batch(jnp.asarray(actions, dtype=jnp.int32).reshape(B, 1), B_pad)
    x_spec, w_spec, b_spec = _common_specs(TB, num_inputs, n_pad)
    alp, ent = pl.pallas_call(
        _logprobs_entropy_kernel,
        grid=(B_pad // TB,),
        out_shape=(jax.ShapeDtypeStruct((B_pad, 1), jnp.float32),
                   jax.ShapeDtypeStruct((B_pad, 1), jnp.float32)),
        in_specs=[x_spec, w_spec, b_spec, _row_spec(TB)],
        out_specs=(_row_spec(TB), _row_spec(TB)),
        compiler_params=_compiler_params(),
        cost_estimate=_cost(B_pad, num_inputs, n_pad, 2),
    )(x_p, w_t, b2d, a_p)
    # batch-mean taken outside the kernel -> exact under any batch grid
    return alp[:B], jnp.mean(ent[:B, 0])


def categorical_sample(x, w_t, b2d, num_outputs, key, deterministic):
    B, num_inputs = x.shape
    n_pad = w_t.shape[1]
    TB, B_pad = _batch_tiling(B)
    x_p = _pad_batch(x.astype(jnp.bfloat16), B_pad)
    x_spec, w_spec, b_spec = _common_specs(TB, num_inputs, n_pad)
    out_shape = jax.ShapeDtypeStruct((B_pad, 1), jnp.int32)
    if deterministic:
        act = pl.pallas_call(
            _sample_det_kernel,
            grid=(B_pad // TB,),
            out_shape=out_shape,
            in_specs=[x_spec, w_spec, b_spec],
            out_specs=_row_spec(TB),
            compiler_params=_compiler_params(),
            cost_estimate=_cost(B_pad, num_inputs, n_pad, 0),
        )(x_p, w_t, b2d)
    else:
        g = jax.random.gumbel(key, (B_pad, n_pad), dtype=jnp.float32)
        act = pl.pallas_call(
            _sample_sto_kernel,
            grid=(B_pad // TB,),
            out_shape=out_shape,
            in_specs=[x_spec, w_spec, b_spec, _lane_spec(TB, n_pad)],
            out_specs=_row_spec(TB),
            compiler_params=_compiler_params(),
            cost_estimate=_cost(B_pad, num_inputs, n_pad, 0),
        )(x_p, w_t, b2d, g)
    return act[:B]


def categorical_act(x, w_t, b2d, num_outputs, key, deterministic):
    """Fused RL step: action, log-prob(action), entropy from ONE kernel launch."""
    B, num_inputs = x.shape
    n_pad = w_t.shape[1]
    TB, B_pad = _batch_tiling(B)
    x_p = _pad_batch(x.astype(jnp.bfloat16), B_pad)
    x_spec, w_spec, b_spec = _common_specs(TB, num_inputs, n_pad)
    out_shapes = (jax.ShapeDtypeStruct((B_pad, 1), jnp.int32),
                  jax.ShapeDtypeStruct((B_pad, 1), jnp.float32),
                  jax.ShapeDtypeStruct((B_pad, 1), jnp.float32))
    out_specs = (_row_spec(TB), _row_spec(TB), _row_spec(TB))
    if deterministic:
        act, alp, ent = pl.pallas_call(
            _act_det_kernel,
            grid=(B_pad // TB,),
            out_shape=out_shapes,
            in_specs=[x_spec, w_spec, b_spec],
            out_specs=out_specs,
            compiler_params=_compiler_params(),
            cost_estimate=_cost(B_pad, num_inputs, n_pad, 2),
        )(x_p, w_t, b2d)
    else:
        g = jax.random.gumbel(key, (B_pad, n_pad), dtype=jnp.float32)
        act, alp, ent = pl.pallas_call(
            _act_sto_kernel,
            grid=(B_pad // TB,),
            out_shape=out_shapes,
            in_specs=[x_spec, w_spec, b_spec, _lane_spec(TB, n_pad)],
            out_specs=out_specs,
            compiler_params=_compiler_params(),
            cost_estimate=_cost(B_pad, num_inputs, n_pad, 2),
        )(x_p, w_t, b2d, g)
    return act[:B], alp[:B], jnp.mean(ent[:B, 0])


if __name__ == "__main__":
    B, num_inputs, num_outputs = 8, 32, 16

    key = jax.random.PRNGKey(0)
    kx, kp, ka, kg = jax.random.split(key, 4)

    w_t, b2d, n_out = init_categorical_params(kp, num_inputs, num_outputs)
    x = jax.random.normal(kx, (B, num_inputs), dtype=jnp.float32)
    actions = jax.random.randint(ka, (B, 1), 0, num_outputs, dtype=jnp.int32)

    # Reference built from the SAME bf16-quantized operands the kernels consume.
    xb = x.astype(jnp.bfloat16).astype(jnp.float32)
    wb = w_t[:, :num_outputs].astype(jnp.float32)
    bb = b2d[:, :num_outputs]
    ref_logits = xb @ wb + bb
    ref_lp = jax.nn.log_softmax(ref_logits, axis=1)
    ref_p = jax.nn.softmax(ref_logits, axis=1)
    ref_ent = -(ref_lp * ref_p).sum(-1).mean()

    # ---- forward (logits) ----
    logits = jax.block_until_ready(categorical_forward(x, w_t, b2d, n_out))
    assert logits.shape == (B, num_outputs)
    assert jnp.allclose(logits, ref_logits, atol=1e-4, rtol=1e-4)

    # ---- fused logprobs_and_entropy ----
    alp, ent = jax.block_until_ready(
        categorical_logprobs_and_entropy(x, w_t, b2d, n_out, actions))
    ref_alp = jnp.take_along_axis(ref_lp, actions, axis=1)
    assert jnp.allclose(alp, ref_alp, atol=1e-4, rtol=1e-4)
    assert jnp.allclose(ent, ref_ent, atol=1e-4, rtol=1e-4)

    # ---- fused sample ----
    det_a = jax.block_until_ready(
        categorical_sample(x, w_t, b2d, n_out, kg, deterministic=True))
    assert det_a.shape == (B, 1)
    assert jnp.array_equal(det_a[:, 0], jnp.argmax(ref_logits, axis=1))

    sto_a = jax.block_until_ready(
        categorical_sample(x, w_t, b2d, n_out, kg, deterministic=False))
    assert sto_a.shape == (B, 1)
    assert bool(jnp.all((sto_a >= 0) & (sto_a < num_outputs)))

    # ---- fused act (sample + logprob + entropy in one launch) ----
    act_a, act_lp, act_ent = jax.block_until_ready(
        categorical_act(x, w_t, b2d, n_out, kg, deterministic=False))
    assert jnp.array_equal(act_a, sto_a)                       # same Gumbel noise
    ref_act_lp = jnp.take_along_axis(ref_lp, act_a, axis=1)
    assert jnp.allclose(act_lp, ref_act_lp, atol=1e-4, rtol=1e-4)
    assert jnp.allclose(act_ent, ref_ent, atol=1e-4, rtol=1e-4)

    print("KERNEL_OK")
</pallas_src>

<mosaic_0001>
module attributes {stable_mosaic.version = 11 : i64} {
  func.func @_linear_kernel(%arg0: i32, %arg1: memref<8x32xbf16, #tpu.memory_space<vmem>>, %arg2: memref<32x128xbf16, #tpu.memory_space<vmem>>, %arg3: memref<1x128xf32, #tpu.memory_space<vmem>>, %arg4: memref<8x128xf32, #tpu.memory_space<vmem>>) attributes {dimension_semantics = [#tpu.dimension_semantics<parallel>], iteration_bounds = array<i64: 1>, scalar_prefetch = 0 : i64, scratch_operands = 0 : i64, tpu.core_type = #tpu.core_type<tc>, window_params = [{transform_indices = @transform_0, window_bounds = array<i64: 8, 32>}, {pipeline_mode = #tpu.pipeline_mode<synchronous>, transform_indices = @transform_1, window_bounds = array<i64: 32, 128>}, {pipeline_mode = #tpu.pipeline_mode<synchronous>, transform_indices = @transform_2, window_bounds = array<i64: 1, 128>}, {transform_indices = @transform_3, window_bounds = array<i64: 8, 128>}]} {
    %c0 = arith.constant 0 : index
    %c0_0 = arith.constant 0 : index
    %0 = vector.load %arg1[%c0, %c0_0] : memref<8x32xbf16, #tpu.memory_space<vmem>>, vector<8x32xbf16>
    %c0_1 = arith.constant 0 : index
    %c0_2 = arith.constant 0 : index
    %1 = vector.load %arg2[%c0_1, %c0_2] : memref<32x128xbf16, #tpu.memory_space<vmem>>, vector<32x128xbf16>
    %cst = arith.constant dense<0.000000e+00> : vector<8x128xf32>
    %2 = tpu.matmul %0, %1, %cst {dimension_numbers = #tpu.dot_dimension_numbers<[1], [0], [0], [1], [0, 0, 1, 1], [], []>} : vector<8x32xbf16>, vector<32x128xbf16>, vector<8x128xf32> -> vector<8x128xf32>
    %c0_3 = arith.constant 0 : index
    %c0_4 = arith.constant 0 : index
    %3 = vector.load %arg3[%c0_3, %c0_4] : memref<1x128xf32, #tpu.memory_space<vmem>>, vector<1x128xf32>
    %4 = vector.broadcast %3 : vector<1x128xf32> to vector<8x128xf32>
    %5 = arith.addf %2, %4 : vector<8x128xf32>
    %c0_5 = arith.constant 0 : index
    %c0_6 = arith.constant 0 : index
    %6 = vector.load %arg4[%c0_5, %c0_6] : memref<8x128xf32, #tpu.memory_space<vmem>>, vector<8x128xf32>
    tpu.vector_store %arg4[%c0_5, %c0_6], %5 {strides = array<i32>} : memref<8x128xf32, #tpu.memory_space<vmem>>, vector<8x128xf32>,
    return
  }
  func.func @transform_0(%arg0: i32) -> (i32, i32) {
    %c0_i32 = arith.constant 0 : i32
    %c0_i32_0 = arith.constant 0 : i32
    return %arg0, %c0_i32 : i32, i32
  }
  func.func @transform_1(%arg0: i32) -> (i32, i32) {
    %c0_i32 = arith.constant 0 : i32
    %c0_i32_0 = arith.constant 0 : i32
    %c0_i32_1 = arith.constant 0 : i32
    return %c0_i32, %c0_i32_0 : i32, i32
  }
  func.func @transform_2(%arg0: i32) -> (i32, i32) {
    %c0_i32 = arith.constant 0 : i32
    %c0_i32_0 = arith.constant 0 : i32
    %c0_i32_1 = arith.constant 0 : i32
    return %c0_i32, %c0_i32_0 : i32, i32
  }
  func.func @transform_3(%arg0: i32) -> (i32, i32) {
    %c0_i32 = arith.constant 0 : i32
    %c0_i32_0 = arith.constant 0 : i32
    return %arg0, %c0_i32 : i32, i32
  }
}

</mosaic_0001>

<bundles_post_ra>
// kernel: tpu_custom_call.1
= control target key start
LH: loop header
LB: loop body
LE: loop exit
PB: predicated region body
PF: predicated region fallthrough
CT: control target
= control target key end

     0   :  { %8 = vsyncpa [#allocation3], 0  ;;  %s256_s0 = inlined_call_operand.hbm [shape: bf16[8,32], index: 0, kind: input, shape index: {}]   ;;  %s257_s1 = inlined_call_operand.hbm [shape: bf16[32,128], index: 1, kind: input, shape index: {}]   ;;  %s258_s2 = inlined_call_operand.vmem [shape: f32[1,128], index: 2, kind: input, shape index: {}]   ;;  %s259_s3 = inlined_call_operand.hbm [shape: f32[8,128], index: 3, kind: output, shape index: {}]  }
   0x1   :  { %9 = vsyncpa [#allocation6], 0 }
   0x2   :  { %10 = vsyncpa [#allocation4], 0  ;;  %s217_s12 = smov [#allocation2]   ;;  %s218_s14 = smov [#allocation5]  }
   0x3   :  { %s17_s13 = sshll.u32 %s217_s12, 4  ;;  %s26_s15 = sshll.u32 %s218_s14, 4  ;;  %s18_s13 = int_to_ptr.vmem [resolvable:$true] %s17_s13  ;;  %s27_s15 = int_to_ptr.vmem [resolvable:$true] %s26_s15 }
   0x4   :  { %s159_s16 = scalar_lea.vmem %s18_s13, 64  ;;  %p164_p1 = scmp.lt.s32.totalorder %s18_s13, %s18_s13 }
   0x5   :  { %p160_p0 = scmp.ne.s32.totalorder %s18_s13, %s159_s16  ;;  %p165_p2 = scmp.lt.s32.totalorder %s159_s16, %s159_s16 }
   0x7   :  { %p166_p3 = por %p165_p2, %p164_p1 }
   0x9   :  { %p167_p4 = pnand %p166_p3, %p160_p0 }
   0xb   :  { %170 = shalt.err (!%p167_p4)
}
   0xc   :  { %20 = dma.hbm_to_vmem [thread:$0]  %s256_s0, 64, %s18_s13, [#allocation3]  }
   0xd   :  { %s179_s19 = scalar_lea.vmem %s27_s15, 256  ;;  %p184_p6 = scmp.lt.s32.totalorder %s27_s15, %s27_s15 }
   0xe   :  { %p180_p5 = scmp.ne.s32.totalorder %s27_s15, %s179_s19  ;;  %p185_p7 = scmp.lt.s32.totalorder %s179_s19, %s179_s19 }
  0x10   :  { %p186_p8 = por %p185_p7, %p184_p6 }
  0x12   :  { %p187_p9 = pnand %p186_p8, %p180_p5 }
  0x14   :  { %190 = shalt.err (!%p187_p9)
}
  0x15   :  { %s219_s20 = smov 64   ;;  %s220_s21 = smov 4  }
  0x16   :  { %32 = dma.hbm_to_vmem [thread:$0]  %s257_s1, 256, %s27_s15, [#allocation6], %s219_s20, %s219_s20, %s220_s21  }
  0x17   :  { %211 = dma.done.wait [#allocation3], 64  }
  0x18   :  { %212 = vsyncadd [#allocation3], 4294967232 }
  0x19   :  { %213 = dma.done.wait [#allocation6], 256  }
  0x1a   :  { %214 = vsyncadd [#allocation6], 4294967040  ;;  %v221_v0 = vmov 0.0   ;;  %vm222_vm0 = vmmov 0   ;;  %v149_v1 = vld [vmem:[#allocation5 + $0x8] sm:$0xff]   ;;  %v150_v2 = vld [vmem:[#allocation5] sm:$0xff]  }
  0x1b   :  { %134 = vmatprep.subr.bf16.mxu0 %v221_v0  ;;  %138 = vmatprep.mubr.msk.bf16.mxu0 %vm222_vm0, %v221_v0  ;;  %v42_v3 = vld [vmem:[#allocation2] sm:$0xf]  ;;  %vm66_vm1 = vcmask 261120   ;;  %s223_s1 = smov [#allocation7]  }
  0x1c   :  { %135 = vmatpush3.bf16.msra.mxu0 %v149_v1  ;;  %v127_v4 = vld [vmem:[%s258_s2] ss:$0 sm:$0xff]  ;;  %s117_s25 = sshll.u32 %s223_s1, 4  ;;  %s118_s25 = int_to_ptr.vmem [resolvable:$true] %s117_s25 }
  0x1d   :  { %136 = vmatprep.subr.bf16.mxu0 %v221_v0  ;;  %s191_s26 = scalar_lea.vmem %s118_s25, 128  ;;  %p196_p11 = scmp.lt.s32.totalorder %s118_s25, %s118_s25 }
  0x1e   :  { %p192_p10 = scmp.ne.s32.totalorder %s118_s25, %s191_s26  ;;  %p197_p12 = scmp.lt.s32.totalorder %s191_s26, %s191_s26 }
  0x20   :  { %137 = vmatpush3.bf16.msra.mxu0 %v150_v2  ;;  %p198_p13 = por %p197_p12, %p196_p11 }
  0x22   :  { %p199_p0 = pnand %p198_p13, %p192_p10 }
  0x23   :  { %139 = vmatmul.mubr.msk.bf16.vlgmr.msra.gmra.mxu0 %vm66_vm1, %v42_v3 }
  0xe3   :  { %v104_v5 = vpop.f32.mrf.mxu0 }
  0xe4   :  { %v105_v6 = vadd.f32 %v127_v4, %v104_v5 }
  0xe5   :  { %v140_v7 = vpop.f32.mrf.mxu0 }
  0xe6   :  { %110 = vst [vmem:[#allocation7] sm:$0xff] %v105_v6 }
  0xe7   :  { %v107_v8 = vpop.f32.mrf.mxu0 }
  0xe8   :  { %202 = shalt.err (!%p199_p0)
}
  0xe9   :  { %120 = dma.vmem_to_hbm [thread:$0]  %s118_s25, 128, %s259_s3, [#allocation4]   ;;  %v141_v9 = vpop.f32.mrf.mxu0 }
  0xea   :  { %215 = dma.done.wait [#allocation4], 128  }
  0xeb   :  { %216 = vsyncadd [#allocation4], 4294967168 }
  0xec   :  { %124 = vsyncpa [#allocation3], 1 }
  0xed   :  { %125 = vsyncpa [#allocation6], 1 }
  0xee   :  { %126 = vsyncpa [#allocation4], 1 }

</bundles_post_ra>
